<compile_context>
chip_gen: v5e
topology: v5e:2x2
jax: 0.10.0
libtpu: 0.0.40
codegen_flags: <defaults>
</compile_context>

<pallas_src>
import functools

import jax
import jax.numpy as jnp
from jax.experimental import pallas as pl
from jax.experimental.pallas import tpu as pltpu


def _row_focal(logits, tgt, gamma):
    """Per-row focal values for one tile. logits: (TN, C) f32, tgt: (TN, 1) int32."""
    tn, c = logits.shape

    # Numerically-stable softmax pieces.
    m = jnp.max(logits, axis=-1, keepdims=True)                   # (TN, 1)   XLU
    shifted = logits - m                                           # (TN, C)   VPU
    exp_shifted = jnp.exp(shifted)                                 # (TN, C)   EUP
    sumexp = jnp.sum(exp_shifted, axis=-1, keepdims=True)          # (TN, 1)   XLU

    # Masked-select gather of the target column (no one-hot multiply, NaN-safe).
    class_ids = jax.lax.broadcasted_iota(jnp.int32, (tn, c), 1)
    hit = class_ids == tgt
    shifted_y = jnp.max(jnp.where(hit, shifted, -jnp.inf),
                        axis=-1, keepdims=True)                    # (TN, 1)
    exp_y = jnp.max(jnp.where(hit, exp_shifted, 0.0),
                    axis=-1, keepdims=True)                        # (TN, 1)

    ce = jnp.log(sumexp) - shifted_y                               # -log softmax(x)[y] >= 0
    pt = exp_y * pl.reciprocal(sumexp)                             # softmax(x)[y]
    one_minus_pt = jnp.maximum(1.0 - pt, 0.0)                      # clamp rounding (pt <= 1)

    if gamma == 2.0:
        mod = one_minus_pt * one_minus_pt                          # exact square, VPU-only
    elif gamma == 1.0:
        mod = one_minus_pt
    elif gamma == 0.0:
        mod = jnp.ones_like(one_minus_pt)
    else:
        mod = one_minus_pt ** jnp.float32(gamma)                   # clamped base -> no NaN

    return mod * ce                                                # (TN, 1)


def _focal_rows_kernel(logits_ref, target_ref, focal_ref, *, gamma):
    """reduction='none': emit per-row focal values."""
    focal_ref[...] = _row_focal(logits_ref[...].astype(jnp.float32),
                                target_ref[...], gamma)


def _focal_psum_kernel(logits_ref, target_ref, psum_ref, *, gamma, n_rows, tile_rows):
    """reduction='mean'/'sum': emit one per-tile partial sum (broadcast over an 8x128 slab)."""
    focal = _row_focal(logits_ref[...].astype(jnp.float32),
                       target_ref[...], gamma)                     # (TN, 1)

    # Mask out padded rows of the ragged final tile (select -> garbage never propagates).
    row0 = pl.program_id(0) * tile_rows
    row_ids = row0 + jax.lax.broadcasted_iota(jnp.int32, focal.shape, 0)
    focal = jnp.where(row_ids < n_rows, focal, 0.0)

    part = jnp.sum(focal, axis=0, keepdims=True)                   # (1, 1)
    psum_ref[...] = jnp.broadcast_to(part[None], psum_ref.shape)   # (1, 8, 128) lane-dense


def focal_loss(logits, target, gamma=2.0, reduction="mean", max_rows_per_tile=None):
    """Pallas focal loss. logits: (N, C) float (f32 or bf16), target: (N,) int class ids.

    Matches FocalLoss(weight=None, gamma, reduction).forward(input, target).
    """
    # TODO(synk): per-class `weight` tensor (module arg, default None) is not implemented.
    n, c = logits.shape
    target2d = target.astype(jnp.int32).reshape(n, 1)

    itemsize = jnp.dtype(logits.dtype).itemsize
    # ~2 MiB logits tile (in input dtype): double-buffered input + f32 temps stay well
    # inside the 32 MiB scoped VMEM limit below on all of v5e/v6e/v7x.
    budget_bytes = 2 * 1024 * 1024
    tn = min(n, max(8, budget_bytes // max(1, c * itemsize)))
    if max_rows_per_tile is not None:
        tn = min(tn, max(1, int(max_rows_per_tile)))
    if tn < n:
        tn = max(8, (tn // 8) * 8)                                 # sublane-aligned tiles
    num_tiles = pl.cdiv(n, tn)

    compiler_params = pltpu.CompilerParams(
        # Tiles are fully independent -> both TensorCores on v7x can run concurrently.
        dimension_semantics=("parallel",),
        vmem_limit_bytes=32 * 1024 * 1024,
    )
    in_specs = [
        pl.BlockSpec((tn, c), lambda i: (i, 0)),
        pl.BlockSpec((tn, 1), lambda i: (i, 0)),
    ]

    if reduction == "mean" or reduction == "sum":
        kernel = functools.partial(_focal_psum_kernel, gamma=float(gamma),
                                   n_rows=n, tile_rows=tn)
        psums = pl.pallas_call(
            kernel,
            out_shape=jax.ShapeDtypeStruct((num_tiles, 8, 128), jnp.float32),
            grid_spec=pltpu.PrefetchScalarGridSpec(
                num_scalar_prefetch=0,
                grid=(num_tiles,),
                in_specs=in_specs,
                out_specs=pl.BlockSpec((1, 8, 128), lambda i: (i, 0, 0)),
            ),
            compiler_params=compiler_params,
        )(logits, target2d)
        total = jnp.sum(psums[:, 0, 0])
        if reduction == "mean":
            return total / jnp.float32(n)
        return total

    # reduction='none' (or anything else, matching the PyTorch fallthrough): per-row values.
    kernel = functools.partial(_focal_rows_kernel, gamma=float(gamma))
    focal = pl.pallas_call(
        kernel,
        out_shape=jax.ShapeDtypeStruct((n, 1), jnp.float32),
        grid_spec=pltpu.PrefetchScalarGridSpec(
            num_scalar_prefetch=0,
            grid=(num_tiles,),
            in_specs=in_specs,
            out_specs=pl.BlockSpec((tn, 1), lambda i: (i, 0)),
        ),
        compiler_params=compiler_params,
    )(logits, target2d)
    return focal[:, 0]


def focal_loss_ref(logits, target, gamma=2.0, reduction="mean"):
    """Pure-JAX reference: F.cross_entropy(reduction='none') + focal modulation."""
    logp = jax.nn.log_softmax(logits.astype(jnp.float32), axis=-1)
    ce = -jnp.take_along_axis(logp, target[:, None].astype(jnp.int32), axis=-1)[:, 0]
    pt = jnp.exp(-ce)
    focal = (1.0 - pt) ** gamma * ce
    if reduction == "mean":
        return jnp.mean(focal)
    if reduction == "sum":
        return jnp.sum(focal)
    return focal


if __name__ == "__main__":
    key = jax.random.PRNGKey(0)
    k1, k2, k3 = jax.random.split(key, 3)

    # Small shapes consistent with a classification head: batch=8, num_classes=32.
    N, C = 8, 32
    logits = jax.random.normal(k1, (N, C), dtype=jnp.float32)
    target = jax.random.randint(k2, (N,), 0, C, dtype=jnp.int32)

    loss = jax.block_until_ready(focal_loss(logits, target))
    ref = focal_loss_ref(logits, target)
    assert jnp.allclose(loss, ref, atol=1e-5, rtol=1e-5), (loss, ref)

    # Multi-tile + ragged-final-block path (N=20 with 8-row tiles -> 3 tiles, 4 padded rows).
    N2 = 20
    logits2 = jax.random.normal(k3, (N2, C), dtype=jnp.float32)
    target2 = jax.random.randint(k2, (N2,), 0, C, dtype=jnp.int32)
    loss2 = jax.block_until_ready(focal_loss(logits2, target2, max_rows_per_tile=8))
    ref2 = focal_loss_ref(logits2, target2)
    assert jnp.allclose(loss2, ref2, atol=1e-5, rtol=1e-5), (loss2, ref2)

    # reduction='sum' and reduction='none' paths.
    loss_sum = jax.block_until_ready(focal_loss(logits2, target2, reduction="sum",
                                                max_rows_per_tile=8))
    ref_sum = focal_loss_ref(logits2, target2, reduction="sum")
    assert jnp.allclose(loss_sum, ref_sum, atol=1e-4, rtol=1e-5), (loss_sum, ref_sum)

    loss_none = jax.block_until_ready(focal_loss(logits2, target2, reduction="none",
                                                 max_rows_per_tile=8))
    ref_none = focal_loss_ref(logits2, target2, reduction="none")
    assert jnp.allclose(loss_none, ref_none, atol=1e-5, rtol=1e-5), (loss_none, ref_none)

    # bf16 logits at the boundary (halves HBM read traffic); kernel math stays f32.
    logits_bf16 = logits.astype(jnp.bfloat16)
    loss_bf = jax.block_until_ready(focal_loss(logits_bf16, target))
    ref_bf = focal_loss_ref(logits_bf16.astype(jnp.float32), target)
    assert jnp.allclose(loss_bf, ref_bf, atol=1e-5, rtol=1e-5), (loss_bf, ref_bf)

    print("KERNEL_OK")
</pallas_src>

<mosaic_0001>
module attributes {stable_mosaic.version = 11 : i64} {
  func.func @_focal_psum_kernel(%arg0: i32, %arg1: memref<8x32xf32, #tpu.memory_space<vmem>>, %arg2: memref<8x1xi32, #tpu.memory_space<vmem>>, %arg3: memref<1x8x128xf32, #tpu.memory_space<vmem>>) attributes {dimension_semantics = [#tpu.dimension_semantics<parallel>], iteration_bounds = array<i64: 1>, scalar_prefetch = 0 : i64, scratch_operands = 0 : i64, tpu.core_type = #tpu.core_type<tc>, window_params = [{transform_indices = @transform_0, window_bounds = array<i64: 8, 32>}, {transform_indices = @transform_1, window_bounds = array<i64: 8, 1>}, {transform_indices = @transform_2, window_bounds = array<i64: 1, 8, 128>}]} {
    %c0 = arith.constant 0 : index
    %c0_0 = arith.constant 0 : index
    %0 = vector.load %arg1[%c0, %c0_0] : memref<8x32xf32, #tpu.memory_space<vmem>>, vector<8x32xf32>
    %c0_1 = arith.constant 0 : index
    %c0_2 = arith.constant 0 : index
    %1 = vector.load %arg2[%c0_1, %c0_2] : memref<8x1xi32, #tpu.memory_space<vmem>>, vector<8x1xi32>
    %cst = arith.constant dense<0xFF800000> : vector<8xf32>
    %2 = vector.multi_reduction <maximumf>, %0, %cst [1] : vector<8x32xf32> to vector<8xf32>
    %3 = vector.shape_cast %2 : vector<8xf32> to vector<8x1xf32>
    %4 = vector.broadcast %3 : vector<8x1xf32> to vector<8x32xf32>
    %5 = arith.subf %0, %4 : vector<8x32xf32>
    %6 = math.exp %5 : vector<8x32xf32>
    %cst_3 = arith.constant dense<0.000000e+00> : vector<8xf32>
    %7 = vector.multi_reduction <add>, %6, %cst_3 [1] : vector<8x32xf32> to vector<8xf32>
    %8 = vector.shape_cast %7 : vector<8xf32> to vector<8x1xf32>
    %9 = tpu.iota {dimensions = array<i32: 1>} : vector<8x32xi32>
    %10 = vector.broadcast %1 : vector<8x1xi32> to vector<8x32xi32>
    %11 = arith.cmpi eq, %9, %10 : vector<8x32xi32>
    %cst_4 = arith.constant 0xFF800000 : f32
    %12 = vector.broadcast %cst_4 : f32 to vector<8x32xf32>
    %13 = arith.select %11, %5, %12 : vector<8x32xi1>, vector<8x32xf32>
    %cst_5 = arith.constant dense<0xFF800000> : vector<8xf32>
    %14 = vector.multi_reduction <maximumf>, %13, %cst_5 [1] : vector<8x32xf32> to vector<8xf32>
    %15 = vector.shape_cast %14 : vector<8xf32> to vector<8x1xf32>
    %cst_6 = arith.constant 0.000000e+00 : f32
    %16 = vector.broadcast %cst_6 : f32 to vector<8x32xf32>
    %17 = arith.select %11, %6, %16 : vector<8x32xi1>, vector<8x32xf32>
    %cst_7 = arith.constant dense<0xFF800000> : vector<8xf32>
    %18 = vector.multi_reduction <maximumf>, %17, %cst_7 [1] : vector<8x32xf32> to vector<8xf32>
    %19 = vector.shape_cast %18 : vector<8xf32> to vector<8x1xf32>
    %20 = math.log %8 : vector<8x1xf32>
    %21 = arith.subf %20, %15 : vector<8x1xf32>
    %22 = tpu.reciprocal %8 : vector<8x1xf32> -> vector<8x1xf32>
    %23 = arith.mulf %19, %22 : vector<8x1xf32>
    %cst_8 = arith.constant 1.000000e+00 : f32
    %24 = vector.broadcast %cst_8 : f32 to vector<8x1xf32>
    %25 = arith.subf %24, %23 : vector<8x1xf32>
    %cst_9 = arith.constant 0.000000e+00 : f32
    %26 = vector.broadcast %cst_9 : f32 to vector<8x1xf32>
    %27 = arith.maximumf %25, %26 : vector<8x1xf32>
    %28 = arith.mulf %27, %27 : vector<8x1xf32>
    %29 = arith.mulf %28, %21 : vector<8x1xf32>
    %c8_i32 = arith.constant 8 : i32
    %30 = arith.muli %arg0, %c8_i32 : i32
    %31 = tpu.iota {dimensions = array<i32: 0>} : vector<8x1xi32>
    %32 = vector.broadcast %30 : i32 to vector<8x1xi32>
    %33 = arith.addi %32, %31 : vector<8x1xi32>
    %c8_i32_10 = arith.constant 8 : i32
    %34 = vector.broadcast %c8_i32_10 : i32 to vector<8x1xi32>
    %35 = arith.cmpi slt, %33, %34 : vector<8x1xi32>
    %cst_11 = arith.constant 0.000000e+00 : f32
    %36 = vector.broadcast %cst_11 : f32 to vector<8x1xf32>
    %37 = arith.select %35, %29, %36 : vector<8x1xi1>, vector<8x1xf32>
    %cst_12 = arith.constant dense<0.000000e+00> : vector<1xf32>
    %38 = vector.multi_reduction <add>, %37, %cst_12 [0] : vector<8x1xf32> to vector<1xf32>
    %39 = vector.shape_cast %38 : vector<1xf32> to vector<1x1xf32>
    %40 = vector.shape_cast %39 : vector<1x1xf32> to vector<1x1x1xf32>
    %41 = vector.shape_cast %40 : vector<1x1x1xf32> to vector<1x1x1xf32>
    %42 = vector.broadcast %41 : vector<1x1x1xf32> to vector<1x8x128xf32>
    %c0_13 = arith.constant 0 : index
    %c0_14 = arith.constant 0 : index
    %c0_15 = arith.constant 0 : index
    %43 = vector.load %arg3[%c0_13, %c0_14, %c0_15] : memref<1x8x128xf32, #tpu.memory_space<vmem>>, vector<1x8x128xf32>
    tpu.vector_store %arg3[%c0_13, %c0_14, %c0_15], %42 {strides = array<i32>} : memref<1x8x128xf32, #tpu.memory_space<vmem>>, vector<1x8x128xf32>,
    return
  }
  func.func @transform_0(%arg0: i32) -> (i32, i32) {
    %c0_i32 = arith.constant 0 : i32
    %c0_i32_0 = arith.constant 0 : i32
    return %arg0, %c0_i32 : i32, i32
  }
  func.func @transform_1(%arg0: i32) -> (i32, i32) {
    %c0_i32 = arith.constant 0 : i32
    %c0_i32_0 = arith.constant 0 : i32
    return %arg0, %c0_i32 : i32, i32
  }
  func.func @transform_2(%arg0: i32) -> (i32, i32, i32) {
    %c0_i32 = arith.constant 0 : i32
    %c0_i32_0 = arith.constant 0 : i32
    %c0_i32_1 = arith.constant 0 : i32
    return %arg0, %c0_i32, %c0_i32_0 : i32, i32, i32
  }
}

</mosaic_0001>

<bundles_post_ra>
// kernel: tpu_custom_call.1
= control target key start
LH: loop header
LB: loop body
LE: loop exit
PB: predicated region body
PF: predicated region fallthrough
CT: control target
= control target key end

     0   :  { %vm14_vm0 = vcmask 261120   ;;  %s155_s0 = inlined_call_operand.vmem [shape: f32[8,32], index: 0, kind: input, shape index: {}]   ;;  %s156_s1 = inlined_call_operand.vmem [shape: s32[8,1], index: 1, kind: input, shape index: {}]   ;;  %s157_s2 = inlined_call_operand.hbm [shape: f32[1,8,128], index: 2, kind: output, shape index: {}]  }
   0x1   :  { %v12_v0 = vld [vmem:[%s155_s0] sm:$0xff] }
   0x2   :  { %7 = vsyncpa [#allocation3], 0  ;;  %v15_v1 = vsel %vm14_vm0, %v12_v0, -inf  ;;  %v125_v2 = vmov 0   ;;  %v13_v3 = vld [vmem:[%s156_s1] sm:$0xff]  ;;  %v24_v9 = vlaneseq  ;;  %s126_s0 = smov [#allocation2]  }
   0x3   :  { %92 = vset.pattern.permute.xlu0 %v125_v2  ;;  %s79_s1 = sshll.u32 %s126_s0, 4  ;;  %s81_s15 = sshll.u32 %s157_s2, 4  ;;  %s80_s1 = int_to_ptr.vmem [resolvable:$true] %s79_s1  ;;  %s82_s15 = int_to_ptr.hbm [resolvable:$true] %s81_s15 }
   0x4   :  { %16 = vmax.xlane.f32.xlu0 %v15_v1  ;;  %v25_v10 = vand.u32 127, %v24_v9 }
  0x18   :  { %27 = vperm.xlu0 %92, %v13_v3  }
  0x77   :  { %v17_v4 = vpop.xlane.xlu0 %16 }
  0x78   :  { %v18_v5 = vsub.f32 %v12_v0, %v17_v4 }
  0x7a   :  { %v19_v6 = vmul.f32 1.442695, %v18_v5 }
  0x7c   :  { %93 = vpow2.f32 %v19_v6 }
  0x82   :  { %v94_v7 = vpop.eup %93 }
  0x83   :  { %v21_v8 = vsel %vm14_vm0, %v94_v7, 0.0 }
  0x84   :  { %22 = vadd.xlane.f32.xlu1 %v21_v8 }
  0x8a   :  { %v28_v11 = vpop.permute.xlu0 %27 }
  0x8b   :  { %vm29_vm1 = vcmp.eq.s32.totalorder %v25_v10, %v28_v11 }
  0x8c   :  { %v34_v12 = vsel %vm29_vm1, %v94_v7, 0.0  ;;  %v30_v13 = vsel %vm29_vm1, %v18_v5, -inf }
  0x8d   :  { %v35_v14 = vsel %vm14_vm0, %v34_v12, -inf  ;;  %v31_v15 = vsel %vm14_vm0, %v30_v13, -inf }
  0x8e   :  { %36 = vmax.xlane.f32.xlu1 %v35_v14  ;;  %32 = vmax.xlane.f32.xlu2 %v31_v15 }
  0xf7   :  { %v23_v16 = vpop.xlane.xlu1 %22 }
  0xf8   :  { %95 = vrcp.f32 %v23_v16  ;;  %v52_v20 = vand.u32 2147483648, %v23_v16  ;;  %v50_v22 = vand.u32 2147483647, %v23_v16  ;;  %vm46_vm3 = vweird.f32 %v23_v16 }
  0xf9   :  { %97 = vlog2.f32 %v23_v16 }
  0xfa   :  { %v53_v24 = vor.u32 1.1754944e-38, %v52_v20  ;;  %vm51_vm5 = vcmp.eq.f32.partialorder %v50_v22, 8.507059e+37 }
  0xfe   :  { %v96_v17 = vpop.eup %95 }
  0xff   :  { %v42_v18 = vmul.f32 %v96_v17, %v23_v16  ;;  %vm47_vm2 = vweird.f32 %v96_v17  ;;  %v98_v26 = vpop.eup %97 }
 0x100   :  { %vm48_vm4 = vmor %vm46_vm3, %vm47_vm2  ;;  %v39_v31 = vmul.f32 0.6931472, %v98_v26 }
 0x101   :  { %v43_v19 = vsub.f32 1.0, %v42_v18  ;;  %v37_v28 = vpop.xlane.xlu1 %36  ;;  %v33_v32 = vpop.xlane.xlu2 %32 }
 0x102   :  { %v40_v35 = vsub.f32 %v39_v31, %v33_v32 }
 0x103   :  { %v44_v21 = vmul.f32 %v96_v17, %v43_v19 }
 0x105   :  { %v45_v23 = vadd.f32 %v96_v17, %v44_v21 }
 0x107   :  { %v49_v25 = vsel %vm48_vm4, %v96_v17, %v45_v23 }
 0x108   :  { %v54_v27 = vsel %vm51_vm5, %v53_v24, %v49_v25 }
 0x109   :  { %v55_v29 = vmul.f32 %v54_v27, %v37_v28 }
 0x10b   :  { %v56_v30 = vsub.f32 1.0, %v55_v29 }
 0x10d   :  { %v57_v33 = vmax.f32 %v56_v30, 0.0 }
 0x10f   :  { %v58_v34 = vmul.f32 %v57_v33, %v57_v33 }
 0x111   :  { %v59_v36 = vmul.f32 %v58_v34, %v40_v35 }
 0x113   :  { %v67_v37 = vrot.slane %v59_v36, 4 }
 0x115   :  { %v68_v38 = vadd.f32 %v67_v37, %v59_v36 }
 0x117   :  { %v69_v39 = vrot.slane %v68_v38, 2 }
 0x119   :  { %v70_v40 = vadd.f32 %v69_v39, %v68_v38 }
 0x11b   :  { %v71_v41 = vrot.slane %v70_v40, 1 }
 0x11d   :  { %v72_v42 = vadd.f32 %v71_v41, %v70_v40 }
 0x11f   :  { %73 = vst [vmem:[#allocation2] sm:$0xff] %v72_v42 }
 0x120   :  { %84 = dma.vmem_to_hbm [thread:$0]  %s80_s1, 128, %s82_s15, [#allocation3]  }
 0x121   :  { %123 = dma.done.wait [#allocation3], 128  }
 0x122   :  { %124 = vsyncadd [#allocation3], 4294967168 }
 0x123   :  { %89 = vsyncpa [#allocation3], 1 }

</bundles_post_ra>
